<compile_context>
chip_gen: v7x
topology: tpu7x:2x2x1
jax: 0.10.0
libtpu: 0.0.40
codegen_flags: <defaults>
</compile_context>

<pallas_src>
import jax
import jax.numpy as jnp
from jax.experimental import pallas as pl
from jax.experimental.pallas import tpu as pltpu


def _round_up(n, m):
    return ((n + m - 1) // m) * m


def _pick_batch_block(B, C, itemsize, budget):
    """Divisor of B; prefer >=2 batch grid steps (multi-TC split) while the
    minimal double-buffered (BB, C, 128) x tile still fits the budget."""
    def fits(bb):
        return 2 * bb * C * 128 * itemsize <= budget

    divisors = [d for d in range(1, B + 1) if B % d == 0]
    pref = [d for d in divisors if fits(d) and (B // d >= 2 or B == 1)]
    if pref:
        return max(pref)
    ok = [d for d in divisors if fits(d)]
    return max(ok) if ok else 1


def _make_ca_kernel(HW, TILE_HW, BB, C, acc_w, n_chunks, needs_mask, max_dtype):
    inv_hw = 1.0 / float(HW)

    def kernel(x_ref, w1_ref, w2_ref, o_ref, sum_acc, max_acc):
        hw = pl.program_id(1)
        n_hw = pl.num_programs(1)

        @pl.when(hw == 0)
        def _init():
            sum_acc[...] = jnp.zeros_like(sum_acc)
            max_acc[...] = jnp.full_like(max_acc, -jnp.inf)

        def _accumulate(masked):
            # Pure VPU elementwise add/max over acc_w-lane chunks; the
            # cross-lane reduce is deferred to the finalize step.
            s = sum_acc[...]
            m = max_acc[...]
            if masked:
                lane = jax.lax.broadcasted_iota(jnp.int32, (BB, C, acc_w), 2)
                base = hw * TILE_HW
            for j in range(n_chunks):
                chunk = x_ref[:, :, pl.ds(j * acc_w, acc_w)]
                if masked:
                    valid = (lane + (base + j * acc_w)) < HW
                    cs = jnp.where(valid, chunk,
                                   jnp.zeros_like(chunk)).astype(jnp.float32)
                    cm = jnp.where(valid, chunk,
                                   jnp.full_like(chunk, -jnp.inf)).astype(max_dtype)
                else:
                    cs = chunk.astype(jnp.float32)
                    cm = chunk.astype(max_dtype)
                s = s + cs
                m = jnp.maximum(m, cm)
            sum_acc[...] = s
            max_acc[...] = m

        if needs_mask:
            # Only the final HW tile can contain out-of-range lanes; keep the
            # iota/select work out of the steady-state streaming loop.
            @pl.when(hw < n_hw - 1)
            def _steady():
                _accumulate(masked=False)

            @pl.when(hw == n_hw - 1)
            def _tail():
                _accumulate(masked=True)
        else:
            _accumulate(masked=False)

        @pl.when(hw == n_hw - 1)
        def _finalize():
            # Lane reduce (single XLU pass) + fused shared MLP + sigmoid.
            avg = jnp.sum(sum_acc[...], axis=-1) * inv_hw                 # (BB, C) f32
            mx = jnp.max(max_acc[...], axis=-1).astype(jnp.float32)       # (BB, C) f32
            w1t = w1_ref[...].astype(jnp.float32)                         # (C, Cr)
            w2t = w2_ref[...].astype(jnp.float32)                         # (Cr, C)

            def fc(v):
                h = jnp.maximum(
                    jnp.dot(v, w1t, preferred_element_type=jnp.float32), 0.0)
                return jnp.dot(h, w2t, preferred_element_type=jnp.float32)

            out = jax.nn.sigmoid(fc(avg) + fc(mx))                        # (BB, C)
            o_ref[...] = out[None].astype(o_ref.dtype)

    return kernel


def channel_attention(x, w1, w2, *, max_tile_hw=4096):
    """x: (B, C, H, W); w1: (C//r, C); w2: (C, C//r). Returns (B, C, 1, 1)."""
    B, C, H, W = x.shape
    HW = H * W
    Cr = w1.shape[0]
    dt = x.dtype
    itemsize = jnp.dtype(dt).itemsize
    max_dtype = dt if jnp.issubdtype(dt, jnp.floating) else jnp.float32

    # --- per-generation VMEM sizing -------------------------------------
    try:
        info = pltpu.get_tpu_info()
        vmem_cap = int(getattr(info, "vmem_capacity_bytes", 64 * 1024 * 1024))
    except Exception:
        vmem_cap = 64 * 1024 * 1024          # conservative (v7x-sized) fallback
    x_buf_budget = vmem_cap // 4             # bytes for the two x double-buffers

    # --- batch block: divisor of B, no padding --------------------------
    BB = _pick_batch_block(B, C, itemsize, x_buf_budget)
    n_bgrid = B // BB
    # NOTE: for B == 1 on multi-TC parts the whole reduction runs on one core;
    # splitting the HW reduction across cores would need a partial-output
    # epilogue and is intentionally not done here.

    # --- lane tile along HW (no HBM padding; mask only the last tile) ---
    if HW < 128:
        TILE_HW = HW                                          # full-dim block
    else:
        cap = max(128, (x_buf_budget // (2 * BB * C * itemsize)) // 128 * 128)
        TILE_HW = max(128, min((HW // 128) * 128, max_tile_hw, cap))
    acc_w = min(TILE_HW, 128)
    n_chunks = TILE_HW // acc_w
    n_hw = pl.cdiv(HW, TILE_HW)
    needs_mask = (HW % TILE_HW) != 0

    # --- raise the scoped-VMEM limit with headroom ----------------------
    w_item = jnp.dtype(w1.dtype).itemsize
    req = (2 * BB * C * TILE_HW * itemsize            # x double buffer
           + 4 * C * Cr * w_item                      # w1t + w2t (x2 buffers)
           + 2 * 2 * BB * C * acc_w * 4               # sum/max accumulators
           + (4 << 20))                               # margin
    vmem_limit = int(min(vmem_cap, max(int(vmem_cap * 0.7), req)))

    # --- inputs: free reshape + host-side weight transposes -------------
    x_flat = x.reshape(B, C, HW)
    w1t = jnp.transpose(w1)                            # (C, Cr)
    w2t = jnp.transpose(w2)                            # (Cr, C)

    kernel = _make_ca_kernel(HW, TILE_HW, BB, C, acc_w, n_chunks,
                             needs_mask, max_dtype)

    out3 = pl.pallas_call(
        kernel,
        out_shape=jax.ShapeDtypeStruct((n_bgrid, BB, C), dt),
        grid_spec=pltpu.PrefetchScalarGridSpec(
            num_scalar_prefetch=0,
            grid=(n_bgrid, n_hw),
            in_specs=[
                pl.BlockSpec((BB, C, TILE_HW), lambda b, hw: (b, 0, hw)),
                pl.BlockSpec((C, Cr), lambda b, hw: (0, 0)),
                pl.BlockSpec((Cr, C), lambda b, hw: (0, 0)),
            ],
            out_specs=pl.BlockSpec((1, BB, C), lambda b, hw: (b, 0, 0)),
            scratch_shapes=[
                pltpu.VMEM((BB, C, acc_w), jnp.float32),   # running sum
                pltpu.VMEM((BB, C, acc_w), max_dtype),     # running max
            ],
        ),
        compiler_params=pltpu.CompilerParams(
            dimension_semantics=("parallel", "arbitrary"),
            vmem_limit_bytes=vmem_limit),
    )(x_flat, w1t, w2t)

    return out3.reshape(B, C)[:, :, None, None]


def channel_attention_ref(x, w1, w2):
    """Pure-JAX reference mirroring the PyTorch forward."""
    avg = jnp.mean(x, axis=(2, 3))                     # (B, C)
    mx = jnp.max(x, axis=(2, 3))                       # (B, C)

    def fc(v):                                         # v: (B, C)
        h = jnp.maximum(v @ w1.T, 0.0)                 # (B, C//r)
        return h @ w2.T                                # (B, C)

    out = jax.nn.sigmoid(fc(avg) + fc(mx))
    return out.reshape(*out.shape, 1, 1)


if __name__ == "__main__":
    B, C, H, W = 2, 4, 16, 16
    reduction = 4
    Cr = C // reduction

    key = jax.random.PRNGKey(0)
    kx, k1, k2 = jax.random.split(key, 3)
    x = jax.random.normal(kx, (B, C, H, W), dtype=jnp.float32)
    # Deterministic synthetic weights for the two bias-free 1x1 convs.
    w1 = jax.random.normal(k1, (Cr, C), dtype=jnp.float32) * 0.5
    w2 = jax.random.normal(k2, (C, Cr), dtype=jnp.float32) * 0.5

    out = jax.block_until_ready(channel_attention(x, w1, w2))
    ref = channel_attention_ref(x, w1, w2)

    assert out.shape == (B, C, 1, 1)
    assert jnp.allclose(out, ref, atol=1e-5, rtol=1e-5), (
        f"max err {jnp.max(jnp.abs(out - ref))}")

    print("KERNEL_OK")
</pallas_src>

<mosaic_0001>
module attributes {stable_mosaic.version = 11 : i64} {
  func.func @kernel(%arg0: i32, %arg1: i32, %arg2: memref<1x4x256xf32, #tpu.memory_space<vmem>>, %arg3: memref<4x1xf32, #tpu.memory_space<vmem>>, %arg4: memref<1x4xf32, #tpu.memory_space<vmem>>, %arg5: memref<1x1x4xf32, #tpu.memory_space<vmem>>, %arg6: memref<1x4x128xf32, #tpu.memory_space<vmem>>, %arg7: memref<1x4x128xf32, #tpu.memory_space<vmem>>) attributes {dimension_semantics = [#tpu.dimension_semantics<parallel>, #tpu.dimension_semantics<arbitrary>], iteration_bounds = array<i64: 2, 1>, scalar_prefetch = 0 : i64, scratch_operands = 2 : i64, tpu.core_type = #tpu.core_type<tc>, window_params = [{transform_indices = @transform_0, window_bounds = array<i64: 1, 4, 256>}, {pipeline_mode = #tpu.pipeline_mode<synchronous>, transform_indices = @transform_1, window_bounds = array<i64: 4, 1>}, {pipeline_mode = #tpu.pipeline_mode<synchronous>, transform_indices = @transform_2, window_bounds = array<i64: 1, 4>}, {transform_indices = @transform_3, window_bounds = array<i64: 1, 1, 4>}]} {
    %c0_i32 = arith.constant 0 : i32
    %0 = arith.cmpi eq, %arg1, %c0_i32 : i32
    %1 = arith.extui %0 : i1 to i32
    %c0_i32_0 = arith.constant 0 : i32
    %2 = arith.cmpi ne, %1, %c0_i32_0 : i32
    scf.if %2 {
      %cst = arith.constant 0.000000e+00 : f32
      %16 = vector.broadcast %cst : f32 to vector<1x4x128xf32>
      %c0_19 = arith.constant 0 : index
      %c0_20 = arith.constant 0 : index
      %c0_21 = arith.constant 0 : index
      %17 = vector.load %arg6[%c0_19, %c0_20, %c0_21] : memref<1x4x128xf32, #tpu.memory_space<vmem>>, vector<1x4x128xf32>
      tpu.vector_store %arg6[%c0_19, %c0_20, %c0_21], %16 {strides = array<i32>} : memref<1x4x128xf32, #tpu.memory_space<vmem>>, vector<1x4x128xf32>,
      %cst_22 = arith.constant 0xFF800000 : f32
      %18 = vector.broadcast %cst_22 : f32 to vector<1x4x128xf32>
      %c0_23 = arith.constant 0 : index
      %c0_24 = arith.constant 0 : index
      %c0_25 = arith.constant 0 : index
      %19 = vector.load %arg7[%c0_23, %c0_24, %c0_25] : memref<1x4x128xf32, #tpu.memory_space<vmem>>, vector<1x4x128xf32>
      tpu.vector_store %arg7[%c0_23, %c0_24, %c0_25], %18 {strides = array<i32>} : memref<1x4x128xf32, #tpu.memory_space<vmem>>, vector<1x4x128xf32>,
    } else {
    }
    %c0 = arith.constant 0 : index
    %c0_1 = arith.constant 0 : index
    %c0_2 = arith.constant 0 : index
    %3 = vector.load %arg6[%c0, %c0_1, %c0_2] : memref<1x4x128xf32, #tpu.memory_space<vmem>>, vector<1x4x128xf32>
    %c0_3 = arith.constant 0 : index
    %c0_4 = arith.constant 0 : index
    %c0_5 = arith.constant 0 : index
    %4 = vector.load %arg7[%c0_3, %c0_4, %c0_5] : memref<1x4x128xf32, #tpu.memory_space<vmem>>, vector<1x4x128xf32>
    %c0_6 = arith.constant 0 : index
    %c0_7 = arith.constant 0 : index
    %c0_8 = arith.constant 0 : index
    %5 = vector.load %arg2[%c0_6, %c0_7, %c0_8] : memref<1x4x256xf32, #tpu.memory_space<vmem>>, vector<1x4x128xf32>
    %6 = arith.addf %3, %5 : vector<1x4x128xf32>
    %7 = arith.maximumf %4, %5 : vector<1x4x128xf32>
    %c0_9 = arith.constant 0 : index
    %c0_10 = arith.constant 0 : index
    %c128 = arith.constant 128 : index
    %8 = vector.load %arg2[%c0_9, %c0_10, %c128] : memref<1x4x256xf32, #tpu.memory_space<vmem>>, vector<1x4x128xf32>
    %9 = arith.addf %6, %8 : vector<1x4x128xf32>
    %10 = arith.maximumf %7, %8 : vector<1x4x128xf32>
    %c0_11 = arith.constant 0 : index
    %c0_12 = arith.constant 0 : index
    %c0_13 = arith.constant 0 : index
    %11 = vector.load %arg6[%c0_11, %c0_12, %c0_13] : memref<1x4x128xf32, #tpu.memory_space<vmem>>, vector<1x4x128xf32>
    tpu.vector_store %arg6[%c0_11, %c0_12, %c0_13], %9 {strides = array<i32>} : memref<1x4x128xf32, #tpu.memory_space<vmem>>, vector<1x4x128xf32>,
    %c0_14 = arith.constant 0 : index
    %c0_15 = arith.constant 0 : index
    %c0_16 = arith.constant 0 : index
    %12 = vector.load %arg7[%c0_14, %c0_15, %c0_16] : memref<1x4x128xf32, #tpu.memory_space<vmem>>, vector<1x4x128xf32>
    tpu.vector_store %arg7[%c0_14, %c0_15, %c0_16], %10 {strides = array<i32>} : memref<1x4x128xf32, #tpu.memory_space<vmem>>, vector<1x4x128xf32>,
    %c0_i32_17 = arith.constant 0 : i32
    %13 = arith.cmpi eq, %arg1, %c0_i32_17 : i32
    %14 = arith.extui %13 : i1 to i32
    %c0_i32_18 = arith.constant 0 : i32
    %15 = arith.cmpi ne, %14, %c0_i32_18 : i32
    scf.if %15 {
      %c0_19 = arith.constant 0 : index
      %c0_20 = arith.constant 0 : index
      %c0_21 = arith.constant 0 : index
      %16 = vector.load %arg6[%c0_19, %c0_20, %c0_21] : memref<1x4x128xf32, #tpu.memory_space<vmem>>, vector<1x4x128xf32>
      %cst = arith.constant dense<0.000000e+00> : vector<1x4xf32>
      %17 = vector.multi_reduction <add>, %16, %cst [2] : vector<1x4x128xf32> to vector<1x4xf32>
      %cst_22 = arith.constant 3.906250e-03 : f32
      %18 = vector.broadcast %cst_22 : f32 to vector<1x4xf32>
      %19 = arith.mulf %17, %18 : vector<1x4xf32>
      %c0_23 = arith.constant 0 : index
      %c0_24 = arith.constant 0 : index
      %c0_25 = arith.constant 0 : index
      %20 = vector.load %arg7[%c0_23, %c0_24, %c0_25] : memref<1x4x128xf32, #tpu.memory_space<vmem>>, vector<1x4x128xf32>
      %cst_26 = arith.constant dense<0xFF800000> : vector<1x4xf32>
      %21 = vector.multi_reduction <maximumf>, %20, %cst_26 [2] : vector<1x4x128xf32> to vector<1x4xf32>
      %c0_27 = arith.constant 0 : index
      %c0_28 = arith.constant 0 : index
      %22 = vector.load %arg3[%c0_27, %c0_28] : memref<4x1xf32, #tpu.memory_space<vmem>>, vector<4x1xf32>
      %c0_29 = arith.constant 0 : index
      %c0_30 = arith.constant 0 : index
      %23 = vector.load %arg4[%c0_29, %c0_30] : memref<1x4xf32, #tpu.memory_space<vmem>>, vector<1x4xf32>
      %cst_31 = arith.constant dense<0.000000e+00> : vector<1x1xf32>
      %24 = tpu.matmul %19, %22, %cst_31 {dimension_numbers = #tpu.dot_dimension_numbers<[1], [0], [0], [1], [0, 0, 1, 1], [], []>} : vector<1x4xf32>, vector<4x1xf32>, vector<1x1xf32> -> vector<1x1xf32>
      %cst_32 = arith.constant 0.000000e+00 : f32
      %25 = vector.broadcast %cst_32 : f32 to vector<1x1xf32>
      %26 = arith.maximumf %24, %25 : vector<1x1xf32>
      %cst_33 = arith.constant dense<0.000000e+00> : vector<1x4xf32>
      %27 = tpu.matmul %26, %23, %cst_33 {dimension_numbers = #tpu.dot_dimension_numbers<[1], [0], [0], [1], [0, 0, 1, 1], [], []>} : vector<1x1xf32>, vector<1x4xf32>, vector<1x4xf32> -> vector<1x4xf32>
      %cst_34 = arith.constant dense<0.000000e+00> : vector<1x1xf32>
      %28 = tpu.matmul %21, %22, %cst_34 {dimension_numbers = #tpu.dot_dimension_numbers<[1], [0], [0], [1], [0, 0, 1, 1], [], []>} : vector<1x4xf32>, vector<4x1xf32>, vector<1x1xf32> -> vector<1x1xf32>
      %cst_35 = arith.constant 0.000000e+00 : f32
      %29 = vector.broadcast %cst_35 : f32 to vector<1x1xf32>
      %30 = arith.maximumf %28, %29 : vector<1x1xf32>
      %cst_36 = arith.constant dense<0.000000e+00> : vector<1x4xf32>
      %31 = tpu.matmul %30, %23, %cst_36 {dimension_numbers = #tpu.dot_dimension_numbers<[1], [0], [0], [1], [0, 0, 1, 1], [], []>} : vector<1x1xf32>, vector<1x4xf32>, vector<1x4xf32> -> vector<1x4xf32>
      %32 = arith.addf %27, %31 : vector<1x4xf32>
      %33 = arith.negf %32 : vector<1x4xf32>
      %34 = math.exp %33 : vector<1x4xf32>
      %cst_37 = arith.constant 1.000000e+00 : f32
      %35 = vector.broadcast %cst_37 : f32 to vector<1x4xf32>
      %36 = arith.addf %35, %34 : vector<1x4xf32>
      %37 = arith.divf %35, %36 : vector<1x4xf32>
      %38 = vector.shape_cast %37 : vector<1x4xf32> to vector<1x1x4xf32>
      %c0_38 = arith.constant 0 : index
      %c0_39 = arith.constant 0 : index
      %c0_40 = arith.constant 0 : index
      %39 = vector.load %arg5[%c0_38, %c0_39, %c0_40] : memref<1x1x4xf32, #tpu.memory_space<vmem>>, vector<1x1x4xf32>
      tpu.vector_store %arg5[%c0_38, %c0_39, %c0_40], %38 {strides = array<i32>} : memref<1x1x4xf32, #tpu.memory_space<vmem>>, vector<1x1x4xf32>,
    } else {
    }
    return
  }
  func.func @transform_0(%arg0: i32, %arg1: i32) -> (i32, i32, i32) {
    %c0_i32 = arith.constant 0 : i32
    %c0_i32_0 = arith.constant 0 : i32
    return %arg0, %c0_i32, %arg1 : i32, i32, i32
  }
  func.func @transform_1(%arg0: i32, %arg1: i32) -> (i32, i32) {
    %c0_i32 = arith.constant 0 : i32
    %c0_i32_0 = arith.constant 0 : i32
    %c0_i32_1 = arith.constant 0 : i32
    return %c0_i32, %c0_i32_0 : i32, i32
  }
  func.func @transform_2(%arg0: i32, %arg1: i32) -> (i32, i32) {
    %c0_i32 = arith.constant 0 : i32
    %c0_i32_0 = arith.constant 0 : i32
    %c0_i32_1 = arith.constant 0 : i32
    return %c0_i32, %c0_i32_0 : i32, i32
  }
  func.func @transform_3(%arg0: i32, %arg1: i32) -> (i32, i32, i32) {
    %c0_i32 = arith.constant 0 : i32
    %c0_i32_0 = arith.constant 0 : i32
    %c0_i32_1 = arith.constant 0 : i32
    return %arg0, %c0_i32, %c0_i32_0 : i32, i32, i32
  }
}

</mosaic_0001>

<bundles_post_ra>
// kernel: tpu_custom_call.1
= control target key start
LH: loop header
LB: loop body
LE: loop exit
PB: predicated region body
PF: predicated region fallthrough
CT: control target
= control target key end

     0   :  { %8 = vsyncpa [#allocation5], 0  ;;  %s1092_s0 = inlined_call_operand.hbm [shape: f32[2,4,256], index: 0, kind: input, shape index: {}]   ;;  %s1093_s1 = inlined_call_operand.vmem [shape: f32[4,1], index: 1, kind: input, shape index: {}]   ;;  %s1094_s2 = inlined_call_operand.vmem [shape: f32[1,4], index: 2, kind: input, shape index: {}]   ;;  %s1095_s3 = inlined_call_operand.hbm [shape: f32[2,1,4], index: 3, kind: output, shape index: {}]  }
   0x1   :  { %10 = vsyncpa [#allocation5 + $0x1], 0 }
   0x2   :  { %11 = vsyncpa [#allocation6], 0 }
   0x3   :  { %13 = vsyncpa [#allocation6 + $0x1], 0  ;;  %s905_s12 = smov 0   ;;  %s907_s13 = smov 0  }
   0x4   :  { %s909_s14 = smov 0   ;;  %s911_s15 = smov 0  }
   0x5   :  { %s913_s16 = smov 0   ;;  %s915_s17 = smov 0  }
   0x6 LB: > { %s645_s18 = sadd.s32 4294967295, %s878_s17   ;;  %s646_s19 = sadd.s32 4294967294, %s878_s17   ;;  %s878_s17 = sphi %s915_s17, %s19_s17   ;;  %s874_s16 = sphi %s913_s16, %s1111_s16   ;;  %s870_s15 = sphi %s911_s15, %s1110_s15   ;;  %s866_s14 = sphi %s909_s14, %s1109_s14   ;;  %s862_s13 = sphi %s907_s13, %s1108_s13   ;;  %s858_s12 = sphi %s905_s12, %s1107_s12  }
   0x7   : > { %s31_s20 = sadd.s32 1, %s874_s16  ;;  %s40_s21 = sadd.s32 1, %s866_s14 }
   0x8   : > { %p33_p0 = scmp.ge.s32.totalorder %s31_s20, 2  ;;  %p47_p1 = scmp.ne.s32.totalorder %s866_s14, %s862_s13 }
   0x9   : > { %p48_p2 = scmp.eq.s32.totalorder %s878_s17, 0  ;;  %p53_p3 = scmp.ne.s32.totalorder %s862_s13, %s858_s12 }
   0xa   : > { %s1113_s20 = smov (%p33_p0, %s31_s20), 0  ;;  %p54_p5 = scmp.eq.s32.totalorder %s645_s18, 0 }
   0xb   : > { %p946_p4 = por %p48_p2, %p47_p1  ;;  %s35_s23 = ssub.s32 %s874_s16, %s1113_s20 }
   0xc   : > { %p119_p6 = scmp.eq.s32.totalorder %s645_s18, 1  ;;  %p38_p7 = scmp.eq.s32.totalorder %s35_s23, 0 }
   0xd   : > { %p952_p8 = por %p54_p5, %p53_p3  ;;  %p125_p10 = scmp.eq.s32.totalorder %s646_s19, 1 }
   0xe   : > { %p956_p9 = por %p119_p6, %p47_p1  ;;  %p709_p13 = scmp.lt.s32.totalorder %s878_s17, 2 }
   0xf   : > { %s961_s26 = scalar_select %p38_p7, %s866_s14, %s40_s21  }
  0x10   : > { %s1099_s25 = scalar_select %p956_p9, 1, 0 }
  0x11   : > { %p963_p11 = por %p125_p10, %p53_p3  ;;  %s151_s28 = sand.u32 1, %s866_s14  }
  0x12   : > { %s649_s29 = sshll.u32 %s151_s28, 3  ;;  %s666_s30 = sshll.u32 %s874_s16, 7 }
  0x13   : > { %s1100_s27 = scalar_select %p963_p11, 1, 0 }
  0x14   : > { %s974_s6 = scalar_lea.hbm %s1092_s0, %s666_s30  ;;  %s155_s7 = scalar_lea.vmem [#allocation4], %s649_s29 }
  0x15   : > { %s165_s8 = sshll.u32 %s155_s7, 4  ;;  %p980_p0 = pnand %p709_p13, %p946_p4  ;;  %s976_s8 = int_to_ptr.vmem [resolvable:$true] %s165_s8 }
  0x16   : > { %s152_s10 = scalar_lea.sflag [#allocation5], %s151_s28  ;;  %s766_s11 = scalar_lea.hbm %s974_s6, 128 }
  0x17   : > { %p767_p3 = scmp.ne.s32.totalorder %s974_s6, %s766_s11  ;;  %p768_p5 = pneg %p980_p0 }
  0x18   : > { %s771_s21 = scalar_lea.hbm %s1092_s0, 256  ;;  %p772_p4 = scmp.lt.u32.totalorder %s974_s6, %s1092_s0 }
  0x19   : > { %p769_p6 = pnand %p768_p5, %p767_p3  ;;  %p773_p10 = scmp.lt.u32.totalorder %s771_s21, %s766_s11 }
  0x1a   : > { %p775_p12 = scmp.lt.u32.totalorder %s766_s11, %s974_s6 }
  0x1b   : > { %p770_p7 = pneg %p769_p6  ;;  %p774_p13 = por %p773_p10, %p772_p4 }
  0x1d   : > { %p776_p1 = por %p775_p12, %p774_p13 }
  0x1f   : > { %p777_p2 = pnand %p776_p1, %p770_p7 }
  0x21   : > { %780 = shalt.err (!%p777_p2)
}
  0x22   : > { %s781_s28 = scalar_lea.vmem %s976_s8, 128  ;;  %s880_s29 = smov [#allocation4]  }
  0x23   : > { %p782_p3 = scmp.ne.s32.totalorder %s976_s8, %s781_s28  ;;  %s786_s30 = sshll.u32 %s880_s29, 4  ;;  %s787_s30 = int_to_ptr.vmem [resolvable:$false] %s786_s30 }
  0x24   : > { %s788_s4 = scalar_lea.vmem %s787_s30, 256  ;;  %p789_p9 = scmp.lt.s32.totalorder %s976_s8, %s787_s30 }
  0x25   : > { %p784_p6 = pnand %p782_p3, %p768_p5  ;;  %p790_p4 = scmp.lt.s32.totalorder %s788_s4, %s781_s28 }
  0x27   : > { %p785_p11 = pneg %p784_p6  ;;  %p791_p10 = por %p790_p4, %p789_p9 }
  0x29   : > { %p792_p12 = pnand %p791_p10, %p785_p11 }
  0x2b   : > { %795 = shalt.err (!%p792_p12)
}
  0x2c   : > { %704 = dma.hbm_to_vmem [thread:$0]  (!%p980_p0), %s974_s6, 128, %s976_s8, %s152_s10  }
  0x2d   : > { %p1102_p1 = scmp.lt.s32.totalorder %s878_s17, 3  ;;  %p1103_p2 = scmp.ge.s32.totalorder %s878_s17, 1 }
  0x2f   : > { %p171_p5 = pnand %p1103_p2, %p1102_p1 }
  0x30   : > { %s1016_s5 = sand.u32 (!%p171_p5), 1, %s862_s13  }
  0x31   : > { %174 = sbr.rel (%p171_p5) target bundleno = 703 (0x2bf), region = 32  ;;  %s653_s7 = sshll.u32 (!%p171_p5), %s1016_s5, 3 }
  0x32   : > { %s177_s11 = scalar_lea.sflag (!%p171_p5), [#allocation5], %s1016_s5  ;;  %s180_s18 = scalar_lea.vmem (!%p171_p5), [#allocation4], %s653_s7 }
  0x38   : > { %849 = dma.done.wait (%p952_p8), %s177_s11, 128  }
  0x39   : > { %851 = vsyncadd (%p952_p8), %s177_s11, 4294967168  ;;  %v881_v0 = vmov 0.0   ;;  %v882_v1 = vmov -inf   ;;  %v211_v2 = vld [vmem:[%s180_s18] sm:$0xf]  ;;  %vm223_vm0 = vcmask 1043456   ;;  %v235_v15 = vlaneseq }
  0x3a   : > { %207 = vst [vmem:[#allocation2] sm:$0xf] %v881_v0  ;;  %208 = vst [vmem:[#allocation3] sm:$0xf] %v882_v1  ;;  %675 = vmatprep.subr.mxu1 %v881_v0  ;;  %685 = vmatprep.subr.mxu0 %v881_v0  ;;  %v214_v4 = vld [vmem:[%s180_s18 + $0x4] sm:$0xf] }
  0x3b   : > { %v232_v14 = vld [vmem:[%s1093_s1] sm:$0xf]  ;;  %vm883_vm1 = vmmov 0   ;;  %v236_v16 = vand.u32 127, %v235_v15  ;;  %v238_v17 = vshrl.u32 %v235_v15, 7  ;;  %vm241_vm2 = vcmask 31744  }
  0x3c   : > { %676 = vmatpush3.msk.msra.mxu1 %vm223_vm0, %v232_v14  ;;  %677 = vmatprep.mubr.msk.f32.mxu1 %vm883_vm1, %v881_v0  ;;  %v233_v24 = vld [vmem:[%s1094_s2] sm:$0x1]  ;;  %vm400_vm3 = vcmask 1040384   ;;  %vm396_vm4 = vcmask 7168   ;;  %s663_s10 = sshll.u32 %s870_s15, 4  ;;  %s201_s19 = scalar_lea.vmem [#allocation7], %s1016_s5 }
  0x3d   : > { %680 = vmatprep.subr.mxu1 %v881_v0  ;;  %687 = vmatprep.mubr.msk.f32.mxu0 %vm883_vm1, %v881_v0  ;;  %v239_v18 = vsub.s32 %v236_v16, %v238_v17  ;;  %s568_s21 = sshll.u32 %s201_s19, 4  ;;  %vm553_vm5 = vcmask 24576   ;;  %s1043_s28 = scalar_lea.hbm %s1095_s3, %s663_s10  ;;  %s1045_s21 = int_to_ptr.vmem [resolvable:$true] %s568_s21 }
  0x3e   : > { %686 = vmatpush3.msk.msra.mxu0 %vm400_vm3, %v233_v24  ;;  %s556_s29 = scalar_lea.sflag [#allocation6], %s1016_s5  ;;  %s796_s30 = scalar_lea.vmem %s1045_s21, 16 }
  0x3f   : > { %690 = vmatprep.subr.mxu0 %v881_v0  ;;  %p797_p8 = scmp.ne.s32.totalorder %s1045_s21, %s796_s30  ;;  %p1104_p9 = scmp.ne.s32.totalorder %s1099_s25, 0 }
  0x40   : > { %s884_s15 = smov [#allocation7]  }
  0x41   : > { %v209_v3 = vld [vmem:[#allocation2] sm:$0xf]  ;;  %v210_v5 = vld [vmem:[#allocation3] sm:$0xf]  ;;  %p798_p11 = pnand %p797_p8, %p1104_p9  ;;  %s800_s4 = sshll.u32 %s884_s15, 4  ;;  %s801_s4 = int_to_ptr.vmem [resolvable:$false] %s800_s4 }
  0x42   : > { %v212_v6 = vadd.f32 %v211_v2, %v209_v3  ;;  %v213_v7 = vmax.f32 %v210_v5, %v211_v2  ;;  %s802_s7 = scalar_lea.vmem %s801_s4, 32  ;;  %p803_p7 = scmp.lt.s32.totalorder %s1045_s21, %s801_s4 }
  0x43   : > { %p799_p0 = pneg %p798_p11  ;;  %p804_p13 = scmp.lt.s32.totalorder %s802_s7, %s796_s30 }
  0x44   : > { %v215_v8 = vadd.f32 %v214_v4, %v212_v6  ;;  %v216_v9 = vmax.f32 %v213_v7, %v214_v4 }
  0x45   : > { %p805_p3 = por %p804_p13, %p803_p7 }
  0x46   : > { %217 = vst [vmem:[#allocation2] sm:$0xf] %v215_v8  ;;  %218 = vst [vmem:[#allocation3] sm:$0xf] %v216_v9 }
  0x47   : > { %p806_p6 = pnand %p805_p3, %p799_p0 }
  0x4d   : > { %v222_v10 = vld [vmem:[#allocation2] sm:$0xf]  ;;  %v228_v11 = vld [vmem:[#allocation3] sm:$0xf] }
  0x4e   : > { %v224_v12 = vsel %vm223_vm0, %v222_v10, 0.0  ;;  %v229_v13 = vsel %vm223_vm0, %v228_v11, -inf }
  0x4f   : > { %225 = vadd.xlane.f32.xlu0 %v224_v12 }
  0x53   : > { %230 = vmax.xlane.f32.xlu0 %v229_v13 }
  0xdc   : > { %v226_v19 = vpop.xlane.xlu0 %225 }
  0xdd   : > { %v227_v20 = vmul.f32 0.00390625, %v226_v19 }
  0xdf   : > { %v240_v21 = vrot.slane %v227_v20, %v239_v18 }
  0xe0   : > { %v231_v22 = vpop.xlane.xlu0 %230 }
  0xe1   : > { %678 = vmatmul.mubr.msk.f32.vlgmr.msra.gmra.mrb[0].mxu1 %vm241_vm2, %v240_v21  ;;  %v322_v23 = vrot.slane %v231_v22, %v239_v18 }
  0xe2   : > { %681 = vmatpush3.msk.msra.mxu1 %vm223_vm0, %v232_v14  ;;  %682 = vmatprep.mubr.msk.f32.mxu1 %vm883_vm1, %v881_v0 }
  0xe5   : > { %683 = vmatmul.mubr.msk.f32.vlgmr.msra.gmra.mrb[2].mxu1 %vm241_vm2, %v322_v23 }
 0x1b4   : > { %v313_v25 = vpop.f32.mrb[0].mxu1 }
 0x1b5   : > { %v679_v26 = vpop.f32.mrb[1].mxu1  ;;  %v317_v30 = vmax.f32 %v313_v25, 0.0 }
 0x1b8   : > { %v391_v27 = vpop.f32.mrb[2].mxu1 }
 0x1b9   : > { %v395_v28 = vmax.f32 %v391_v27, 0.0  ;;  %v684_v29 = vpop.f32.mrb[3].mxu1 }
 0x1bb   : > { %688 = vmatmul.mubr.msk.f32.vlgmr.msra.gmra.mrb[0].mxu0 %vm396_vm4, %v395_v28 }
 0x1bc   : > { %691 = vmatpush3.msk.msra.mxu0 %vm400_vm3, %v233_v24  ;;  %692 = vmatprep.mubr.msk.f32.mxu0 %vm883_vm1, %v881_v0 }
 0x1c3   : > { %693 = vmatmul.mubr.msk.f32.vlgmr.msra.gmra.mrb[0].mxu0 %vm396_vm4, %v317_v30 }
 0x296   : > { %v543_v31 = vpop.f32.mrb[0].mxu0 }
 0x297   : > { %v662_v32 = vmul.f32 -1.442695, %v543_v31  ;;  %v694_v33 = vpop.f32.mrb[1].mxu0 }
 0x299   : > { %762 = vpow2.f32 %v662_v32 }
 0x2a3   : > { %v763_v34 = vpop.eup %762 }
 0x2a4   : > { %v550_v35 = vadd.f32 1.0, %v763_v34 }
 0x2a6   : > { %764 = vrcp.f32 %v550_v35 }
 0x2b0   : > { %v765_v36 = vpop.eup %764 }
 0x2b1   : > { %554 = vst.msk [vmem:[%s201_s19] sm:$0x1] %vm553_vm5, %v765_v36 }
 0x2b2   : > { %809 = shalt.err (!%p806_p6)
}
 0x2b3   : > { %s810_s5 = scalar_lea.hbm %s1043_s28, 16  ;;  %s814_s24 = scalar_lea.hbm %s1095_s3, 32 }
 0x2b4   : > { %p811_p4 = scmp.ne.s32.totalorder %s1043_s28, %s810_s5  ;;  %p815_p1 = scmp.lt.u32.totalorder %s1043_s28, %s1095_s3 }
 0x2b5   : > { %p816_p2 = scmp.lt.u32.totalorder %s814_s24, %s810_s5  ;;  %p818_p8 = scmp.lt.u32.totalorder %s810_s5, %s1043_s28 }
 0x2b6   : > { %p812_p10 = pnand %p811_p4, %p1104_p9 }
 0x2b7   : > { %p817_p5 = por %p816_p2, %p815_p1 }
 0x2b8   : > { %p813_p12 = pneg %p812_p10 }
 0x2b9   : > { %p819_p11 = por %p818_p8, %p817_p5 }
 0x2bb   : > { %p820_p0 = pnand %p819_p11, %p813_p12 }
 0x2bd   : > { %823 = shalt.err (!%p820_p0)
}
 0x2be   : > { %699 = dma.vmem_to_hbm [thread:$0]  (%p1104_p9), %s1045_s21, 16, %s1043_s28, %s556_s29  }
 0x2bf PF: > { %s580_s9 = sand.u32 1, %s858_s12   ;;  %p1105_p7 = scmp.ne.s32.totalorder %s1100_s27, 0 }
 0x2c0   : > { %p1106_p13 = scmp.ge.s32.totalorder %s878_s17, 2  ;;  %s581_s10 = scalar_lea.sflag [#allocation6], %s580_s9 }
 0x2c2   : > { %p706_p3 = pnand %p1106_p13, %p1105_p7 }
 0x2c4   : > { %853 = dma.done.wait (!%p706_p3), %s581_s10, 16  }
 0x2c5   : > { %855 = vsyncadd (!%p706_p3), %s581_s10, 4294967280  ;;  %s19_s17 = sadd.s32 1, %s878_s17   ;;  %s1107_s12 = smov %s862_s13 }
 0x2c6   : > { %p16_p6 = scmp.ge.s32.totalorder %s19_s17, 4   ;;  %s1108_s13 = smov %s866_s14 }
 0x2c7   : > { %s1109_s14 = smov %s961_s26  ;;  %s1110_s15 = smov %s874_s16 }
 0x2c8   : > { %s1111_s16 = smov %s1113_s20  ;;  %18 = sbr.rel (!%p16_p6) target bundleno = 6 (0x6), region = 85 }
 0x2cf   :  { %585 = vsyncpa [#allocation5], 1 }
 0x2d0   :  { %587 = vsyncpa [#allocation5 + $0x1], 1 }
 0x2d1   :  { %588 = vsyncpa [#allocation6], 1 }
 0x2d2   :  { %590 = vsyncpa [#allocation6 + $0x1], 1 }

</bundles_post_ra>
